<compile_context>
chip_gen: v5e
topology: v5e:2x2
jax: 0.10.0
libtpu: 0.0.40
codegen_flags: <defaults>
</compile_context>

<pallas_src>
import functools

import jax
import jax.numpy as jnp
from jax.experimental import pallas as pl
from jax.experimental.pallas import tpu as pltpu

N_EMBD = 128
HIDDEN = 4 * N_EMBD
DROPOUT = 0.2


def _ffn_kernel(*refs, training: bool, dropout_p: float, hidden_chunk: int):
    if training:
        x_ref, w1_ref, b1_ref, w2_ref, b2_ref, bits_ref, o_ref = refs
    else:
        x_ref, w1_ref, b1_ref, w2_ref, b2_ref, o_ref = refs
        bits_ref = None

    tm = x_ref.shape[0]
    # bf16 into the MXU, f32 accumulation.
    x = x_ref[...].astype(jnp.bfloat16)

    y = jnp.zeros((tm, o_ref.shape[1]), dtype=jnp.float32)
    n_chunks = HIDDEN // hidden_chunk
    # Chunk the hidden dimension so the live ReLU intermediate stays (tm, hidden_chunk)
    # instead of a full (tm, HIDDEN) f32 slab that would spill to VMEM at large tm.
    for c in range(n_chunks):
        lo = c * hidden_chunk
        hi = lo + hidden_chunk
        h = jnp.dot(x, w1_ref[:, lo:hi], preferred_element_type=jnp.float32)
        h = h + b1_ref[:, lo:hi]
        h = jnp.maximum(h, 0.0)                                   # ReLU
        y = y + jnp.dot(h.astype(jnp.bfloat16), w2_ref[lo:hi, :],
                        preferred_element_type=jnp.float32)
    y = y + b2_ref[...]

    if training:
        # Inverted dropout: integer threshold compare on raw uint32 bits.
        # P(keep) = 1 - p; kept values scaled by 1/(1-p).
        thresh = jnp.uint32(int(dropout_p * (2 ** 32)))
        keep = bits_ref[...] >= thresh
        y = jnp.where(keep, y * (1.0 / (1.0 - dropout_p)), 0.0)

    o_ref[...] = y.astype(o_ref.dtype)


def _round_up(a, b):
    return ((a + b - 1) // b) * b


def feed_forward(x, w1, b1, w2, b2, *, training=False, key=None,
                 tm=256, hidden_chunk=256):
    """x: (B, T, C) float32.  Returns (B, T, C).

    tm defaults to 256 (multiple of 256 -> full MXU passes on v6e/v7x; also a
    multiple of 128 for v5e).  For large M this gives a multi-step grid so both
    v7x TensorCores get work via dimension_semantics=("parallel",).
    """
    B, T, C = x.shape
    assert C == N_EMBD
    assert HIDDEN % hidden_chunk == 0

    M = B * T
    tm = _round_up(max(tm, 8), 8)
    tm_eff = min(tm, _round_up(M, 8))        # tiny inputs: single tile covering all rows
    M_pad = _round_up(M, tm_eff)

    x2 = x.reshape(M, C)
    if M_pad != M:
        x2 = jnp.pad(x2, ((0, M_pad - M), (0, 0)))

    # bf16 weights for the MXU (halves weight DMA too); biases stay f32.
    w1_bf = w1.astype(jnp.bfloat16)
    w2_bf = w2.astype(jnp.bfloat16)
    b1_2d = b1.reshape(1, HIDDEN).astype(jnp.float32)
    b2_2d = b2.reshape(1, N_EMBD).astype(jnp.float32)

    grid = (M_pad // tm_eff,)

    in_specs = [
        pl.BlockSpec((tm_eff, C), lambda i: (i, 0)),      # x row tile
        pl.BlockSpec((C, HIDDEN), lambda i: (0, 0)),      # W1 (resident across grid)
        pl.BlockSpec((1, HIDDEN), lambda i: (0, 0)),      # b1
        pl.BlockSpec((HIDDEN, C), lambda i: (0, 0)),      # W2 (resident across grid)
        pl.BlockSpec((1, C), lambda i: (0, 0)),           # b2
    ]
    inputs = [x2, w1_bf, b1_2d, w2_bf, b2_2d]

    if training:
        if key is None:
            key = jax.random.PRNGKey(0)
        # Host-side (on-device, outside the kernel) random bits: platform-agnostic,
        # no seed/tile collision issues, one uint32 per output element.
        bits = jax.random.bits(key, (M_pad, C), dtype=jnp.uint32)
        in_specs.append(pl.BlockSpec((tm_eff, C), lambda i: (i, 0)))
        inputs.append(bits)

    kernel = functools.partial(_ffn_kernel, training=training,
                               dropout_p=DROPOUT, hidden_chunk=hidden_chunk)

    flops = 4 * M_pad * C * HIDDEN           # two (M,C,H) matmuls, 2 flops/MAC
    bytes_accessed = (x2.size * 4 + M_pad * C * 4
                      + w1_bf.size * 2 + w2_bf.size * 2
                      + b1_2d.size * 4 + b2_2d.size * 4
                      + (M_pad * C * 4 if training else 0))

    out = pl.pallas_call(
        kernel,
        out_shape=jax.ShapeDtypeStruct((M_pad, C), x.dtype),
        grid_spec=pltpu.PrefetchScalarGridSpec(
            num_scalar_prefetch=0,
            grid=grid,
            in_specs=in_specs,
            out_specs=pl.BlockSpec((tm_eff, C), lambda i: (i, 0)),
        ),
        compiler_params=pltpu.CompilerParams(
            dimension_semantics=("parallel",)),
        cost_estimate=pl.CostEstimate(
            flops=flops, transcendentals=0, bytes_accessed=bytes_accessed),
    )(*inputs)

    if M_pad != M:
        out = out[:M]
    return out.reshape(B, T, C)


def init_params(key):
    """Matches PyTorch nn.Linear default init: U[-1/sqrt(fan_in), +1/sqrt(fan_in)]."""
    k1, k2, k3, k4 = jax.random.split(key, 4)
    bound1 = 1.0 / jnp.sqrt(N_EMBD)
    bound2 = 1.0 / jnp.sqrt(HIDDEN)
    # Stored as (in, out) -- transpose of torch's (out, in).
    w1 = jax.random.uniform(k1, (N_EMBD, HIDDEN), jnp.float32, -bound1, bound1)
    b1 = jax.random.uniform(k2, (HIDDEN,), jnp.float32, -bound1, bound1)
    w2 = jax.random.uniform(k3, (HIDDEN, N_EMBD), jnp.float32, -bound2, bound2)
    b2 = jax.random.uniform(k4, (N_EMBD,), jnp.float32, -bound2, bound2)
    return w1, b1, w2, b2


def feed_forward_ref(x, w1, b1, w2, b2):
    """Pure-JAX reference (eval mode: dropout is identity)."""
    h = jnp.maximum(x @ w1 + b1, 0.0)
    return h @ w2 + b2


if __name__ == "__main__":
    key = jax.random.PRNGKey(0)
    kx, kp, kd = jax.random.split(key, 3)

    B, T = 2, 8                                 # small demo shapes; M = 16 rows
    x = jax.random.normal(kx, (B, T, N_EMBD), dtype=jnp.float32)
    w1, b1, w2, b2 = init_params(kp)

    # Eval-mode forward (dropout = identity), the deterministic path.
    y = feed_forward(x, w1, b1, w2, b2, training=False)
    y = jax.block_until_ready(y)

    # Correctness check.  The kernel feeds the MXU bf16-rounded weights/activations
    # (f32 accumulation), so compare against a reference using the same rounded
    # weights with a tolerance covering the bf16 activation rounding.
    w1_r = w1.astype(jnp.bfloat16).astype(jnp.float32)
    w2_r = w2.astype(jnp.bfloat16).astype(jnp.float32)
    y_ref = feed_forward_ref(x, w1_r, b1, w2_r, b2)
    assert jnp.allclose(y, y_ref, atol=5e-2, rtol=5e-2), "mismatch vs reference"

    # Training path: stochastic inverted dropout via uint32 threshold mask.
    y_train = feed_forward(x, w1, b1, w2, b2, training=True, key=kd)
    y_train = jax.block_until_ready(y_train)
    drop_frac = float(jnp.mean((y_train == 0.0).astype(jnp.float32)))
    assert 0.05 < drop_frac < 0.4, f"unexpected dropout fraction {drop_frac}"

    print("KERNEL_OK")
</pallas_src>

<mosaic_0001>
module attributes {stable_mosaic.version = 11 : i64} {
  func.func @_ffn_kernel(%arg0: i32, %arg1: memref<16x128xf32, #tpu.memory_space<vmem>>, %arg2: memref<128x512xbf16, #tpu.memory_space<vmem>>, %arg3: memref<1x512xf32, #tpu.memory_space<vmem>>, %arg4: memref<512x128xbf16, #tpu.memory_space<vmem>>, %arg5: memref<1x128xf32, #tpu.memory_space<vmem>>, %arg6: memref<16x128xf32, #tpu.memory_space<vmem>>) attributes {dimension_semantics = [#tpu.dimension_semantics<parallel>], iteration_bounds = array<i64: 1>, scalar_prefetch = 0 : i64, scratch_operands = 0 : i64, tpu.core_type = #tpu.core_type<tc>, window_params = [{transform_indices = @transform_0, window_bounds = array<i64: 16, 128>}, {pipeline_mode = #tpu.pipeline_mode<synchronous>, transform_indices = @transform_1, window_bounds = array<i64: 128, 512>}, {pipeline_mode = #tpu.pipeline_mode<synchronous>, transform_indices = @transform_2, window_bounds = array<i64: 1, 512>}, {pipeline_mode = #tpu.pipeline_mode<synchronous>, transform_indices = @transform_3, window_bounds = array<i64: 512, 128>}, {pipeline_mode = #tpu.pipeline_mode<synchronous>, transform_indices = @transform_4, window_bounds = array<i64: 1, 128>}, {transform_indices = @transform_5, window_bounds = array<i64: 16, 128>}]} {
    %c0 = arith.constant 0 : index
    %c0_0 = arith.constant 0 : index
    %0 = vector.load %arg1[%c0, %c0_0] : memref<16x128xf32, #tpu.memory_space<vmem>>, vector<16x128xf32>
    %1 = arith.truncf %0 : vector<16x128xf32> to vector<16x128xbf16>
    %cst = arith.constant 0.000000e+00 : f32
    %2 = vector.broadcast %cst : f32 to vector<16x128xf32>
    %c0_1 = arith.constant 0 : index
    %c0_2 = arith.constant 0 : index
    %3 = vector.load %arg2[%c0_1, %c0_2] : memref<128x512xbf16, #tpu.memory_space<vmem>>, vector<128x256xbf16>
    %cst_3 = arith.constant dense<0.000000e+00> : vector<16x256xf32>
    %4 = tpu.matmul %1, %3, %cst_3 {dimension_numbers = #tpu.dot_dimension_numbers<[1], [0], [0], [1], [0, 0, 1, 1], [], []>} : vector<16x128xbf16>, vector<128x256xbf16>, vector<16x256xf32> -> vector<16x256xf32>
    %c0_4 = arith.constant 0 : index
    %c0_5 = arith.constant 0 : index
    %5 = vector.load %arg3[%c0_4, %c0_5] : memref<1x512xf32, #tpu.memory_space<vmem>>, vector<1x256xf32>
    %6 = vector.broadcast %5 : vector<1x256xf32> to vector<16x256xf32>
    %7 = arith.addf %4, %6 : vector<16x256xf32>
    %cst_6 = arith.constant 0.000000e+00 : f32
    %8 = vector.broadcast %cst_6 : f32 to vector<16x256xf32>
    %9 = arith.maximumf %7, %8 : vector<16x256xf32>
    %10 = arith.truncf %9 : vector<16x256xf32> to vector<16x256xbf16>
    %c0_7 = arith.constant 0 : index
    %c0_8 = arith.constant 0 : index
    %11 = vector.load %arg4[%c0_7, %c0_8] : memref<512x128xbf16, #tpu.memory_space<vmem>>, vector<256x128xbf16>
    %cst_9 = arith.constant dense<0.000000e+00> : vector<16x128xf32>
    %12 = tpu.matmul %10, %11, %cst_9 {dimension_numbers = #tpu.dot_dimension_numbers<[1], [0], [0], [1], [0, 0, 1, 1], [], []>} : vector<16x256xbf16>, vector<256x128xbf16>, vector<16x128xf32> -> vector<16x128xf32>
    %13 = arith.addf %2, %12 : vector<16x128xf32>
    %c0_10 = arith.constant 0 : index
    %c256 = arith.constant 256 : index
    %14 = vector.load %arg2[%c0_10, %c256] : memref<128x512xbf16, #tpu.memory_space<vmem>>, vector<128x256xbf16>
    %cst_11 = arith.constant dense<0.000000e+00> : vector<16x256xf32>
    %15 = tpu.matmul %1, %14, %cst_11 {dimension_numbers = #tpu.dot_dimension_numbers<[1], [0], [0], [1], [0, 0, 1, 1], [], []>} : vector<16x128xbf16>, vector<128x256xbf16>, vector<16x256xf32> -> vector<16x256xf32>
    %c0_12 = arith.constant 0 : index
    %c256_13 = arith.constant 256 : index
    %16 = vector.load %arg3[%c0_12, %c256_13] : memref<1x512xf32, #tpu.memory_space<vmem>>, vector<1x256xf32>
    %17 = vector.broadcast %16 : vector<1x256xf32> to vector<16x256xf32>
    %18 = arith.addf %15, %17 : vector<16x256xf32>
    %cst_14 = arith.constant 0.000000e+00 : f32
    %19 = vector.broadcast %cst_14 : f32 to vector<16x256xf32>
    %20 = arith.maximumf %18, %19 : vector<16x256xf32>
    %21 = arith.truncf %20 : vector<16x256xf32> to vector<16x256xbf16>
    %c256_15 = arith.constant 256 : index
    %c0_16 = arith.constant 0 : index
    %22 = vector.load %arg4[%c256_15, %c0_16] : memref<512x128xbf16, #tpu.memory_space<vmem>>, vector<256x128xbf16>
    %cst_17 = arith.constant dense<0.000000e+00> : vector<16x128xf32>
    %23 = tpu.matmul %21, %22, %cst_17 {dimension_numbers = #tpu.dot_dimension_numbers<[1], [0], [0], [1], [0, 0, 1, 1], [], []>} : vector<16x256xbf16>, vector<256x128xbf16>, vector<16x128xf32> -> vector<16x128xf32>
    %24 = arith.addf %13, %23 : vector<16x128xf32>
    %c0_18 = arith.constant 0 : index
    %c0_19 = arith.constant 0 : index
    %25 = vector.load %arg5[%c0_18, %c0_19] : memref<1x128xf32, #tpu.memory_space<vmem>>, vector<1x128xf32>
    %26 = vector.broadcast %25 : vector<1x128xf32> to vector<16x128xf32>
    %27 = arith.addf %24, %26 : vector<16x128xf32>
    %c0_20 = arith.constant 0 : index
    %c0_21 = arith.constant 0 : index
    %28 = vector.load %arg6[%c0_20, %c0_21] : memref<16x128xf32, #tpu.memory_space<vmem>>, vector<16x128xf32>
    tpu.vector_store %arg6[%c0_20, %c0_21], %27 {strides = array<i32>} : memref<16x128xf32, #tpu.memory_space<vmem>>, vector<16x128xf32>,
    return
  }
  func.func @transform_0(%arg0: i32) -> (i32, i32) {
    %c0_i32 = arith.constant 0 : i32
    %c0_i32_0 = arith.constant 0 : i32
    return %arg0, %c0_i32 : i32, i32
  }
  func.func @transform_1(%arg0: i32) -> (i32, i32) {
    %c0_i32 = arith.constant 0 : i32
    %c0_i32_0 = arith.constant 0 : i32
    %c0_i32_1 = arith.constant 0 : i32
    return %c0_i32, %c0_i32_0 : i32, i32
  }
  func.func @transform_2(%arg0: i32) -> (i32, i32) {
    %c0_i32 = arith.constant 0 : i32
    %c0_i32_0 = arith.constant 0 : i32
    %c0_i32_1 = arith.constant 0 : i32
    return %c0_i32, %c0_i32_0 : i32, i32
  }
  func.func @transform_3(%arg0: i32) -> (i32, i32) {
    %c0_i32 = arith.constant 0 : i32
    %c0_i32_0 = arith.constant 0 : i32
    %c0_i32_1 = arith.constant 0 : i32
    return %c0_i32, %c0_i32_0 : i32, i32
  }
  func.func @transform_4(%arg0: i32) -> (i32, i32) {
    %c0_i32 = arith.constant 0 : i32
    %c0_i32_0 = arith.constant 0 : i32
    %c0_i32_1 = arith.constant 0 : i32
    return %c0_i32, %c0_i32_0 : i32, i32
  }
  func.func @transform_5(%arg0: i32) -> (i32, i32) {
    %c0_i32 = arith.constant 0 : i32
    %c0_i32_0 = arith.constant 0 : i32
    return %arg0, %c0_i32 : i32, i32
  }
}

</mosaic_0001>

<bundles_post_ra>
// kernel: tpu_custom_call.1
= control target key start
LH: loop header
LB: loop body
LE: loop exit
PB: predicated region body
PF: predicated region fallthrough
CT: control target
= control target key end

     0   :  { %10 = vsyncpa [#allocation3], 0  ;;  %s1223_s0 = inlined_call_operand.hbm [shape: f32[16,128], index: 0, kind: input, shape index: {}]   ;;  %s1224_s1 = inlined_call_operand.hbm [shape: bf16[128,512], index: 1, kind: input, shape index: {}]   ;;  %s1225_s2 = inlined_call_operand.hbm [shape: f32[1,512], index: 2, kind: input, shape index: {}]   ;;  %s1226_s3 = inlined_call_operand.hbm [shape: bf16[512,128], index: 3, kind: input, shape index: {}]   ;;  %s1227_s4 = inlined_call_operand.vmem [shape: f32[1,128], index: 4, kind: input, shape index: {}]   ;;  %s1228_s5 = inlined_call_operand.hbm [shape: f32[16,128], index: 5, kind: output, shape index: {}]  }
   0x1   :  { %11 = vsyncpa [#allocation6], 0 }
   0x2   :  { %12 = vsyncpa [#allocation9], 0  ;;  %s31_s20 = sshll.u32 %s1224_s1, 4  ;;  %s32_s20 = int_to_ptr.hbm [resolvable:$true] %s31_s20 }
   0x3   :  { %13 = vsyncpa [#allocation4], 0  ;;  %s1158_s21 = smov [#allocation5]   ;;  %s18_s25 = sshll.u32 %s1223_s0, 4  ;;  %s19_s25 = int_to_ptr.hbm [resolvable:$true] %s18_s25 }
   0x4   :  { %s33_s22 = sshll.u32 %s1158_s21, 4  ;;  %s1159_s26 = smov 256   ;;  %s34_s22 = int_to_ptr.vmem [resolvable:$true] %s33_s22 }
   0x5   :  { %s1160_s27 = smov 16   ;;  %s1161_s28 = smov [#allocation2]  }
   0x6   :  { %39 = dma.hbm_to_vmem [thread:$0]  %s32_s20, 4096, %s34_s22, [#allocation6], %s1159_s26, %s1159_s26, %s1160_s27  }
   0x7   :  { %s20_s29 = sshll.u32 %s1161_s28, 4  ;;  %s1162_s30 = smov 128   ;;  %s21_s29 = int_to_ptr.vmem [resolvable:$true] %s20_s29 }
   0x8   :  { %s1163_s6 = smov 8   ;;  %s45_s8 = sshll.u32 %s1225_s2, 4  ;;  %s46_s8 = int_to_ptr.hbm [resolvable:$true] %s45_s8 }
   0x9   :  { %26 = dma.hbm_to_vmem [thread:$0]  %s19_s25, 256, %s21_s29, [#allocation3], %s1162_s30, %s1162_s30, %s1163_s6  }
   0xa   :  { %s1164_s9 = smov [#allocation7]   ;;  %s55_s12 = sshll.u32 %s1226_s3, 4  ;;  %s56_s12 = int_to_ptr.hbm [resolvable:$true] %s55_s12 }
   0xb   :  { %s47_s0 = sshll.u32 %s1164_s9, 4  ;;  %s1165_s13 = smov [#allocation8]   ;;  %s48_s0 = int_to_ptr.vmem [resolvable:$true] %s47_s0 }
   0xc   :  { %50 = dma.hbm_to_vmem [thread:$0]  %s46_s8, 64, %s48_s0, [#allocation6]  }
   0xd   :  { %s57_s14 = sshll.u32 %s1165_s13, 4  ;;  %s1166_s15 = smov 64   ;;  %s58_s14 = int_to_ptr.vmem [resolvable:$true] %s57_s14 }
   0xe   :  { %s1167_s16 = smov 4  }
   0xf   :  { %63 = dma.hbm_to_vmem [thread:$0]  %s56_s12, 4096, %s58_s14, [#allocation9], %s1166_s15, %s1166_s15, %s1167_s16  }
  0x10   :  { %1150 = dma.done.wait [#allocation3], 256  }
  0x11   :  { %1151 = vsyncadd [#allocation3], 4294967040 }
  0x12   :  { %1152 = dma.done.wait [#allocation6], 4160  }
  0x13   :  { %1153 = vsyncadd [#allocation6], 4294963136 }
  0x14   :  { %1154 = dma.done.wait [#allocation9], 4096  }
  0x15   :  { %1155 = vsyncadd [#allocation9], 4294963200  ;;  %v756_v0 = vld [vmem:[#allocation5 + $0xe0] sm:$0xf]  ;;  %v969_v1 = vld [vmem:[#allocation5 + $0xec] sm:$0xf0] }
  0x16   :  { %v968_v2 = vld [vmem:[#allocation5 + $0xe4] sm:$0xf]  ;;  %v757_v3 = vor.u32 %v969_v1, %v756_v0  ;;  %v758_v4 = vld [vmem:[#allocation5 + $0xf0] sm:$0xf0]  ;;  %v820_v5 = vld [vmem:[#allocation5 + $0xe8] sm:$0xf] }
  0x17   :  { %v1001_v6 = vld [vmem:[#allocation5 + $0xf4] sm:$0xf0]  ;;  %v761_v7 = vor.u32 %v968_v2, %v758_v4  ;;  %v1000_v9 = vld [vmem:[#allocation5 + $0xec] sm:$0xf]  ;;  %v822_v10 = vld [vmem:[#allocation5 + $0xf8] sm:$0xf0] }
  0x18   :  { %v821_v8 = vor.u32 %v1001_v6, %v820_v5  ;;  %v748_v11 = vld [vmem:[#allocation5 + $0xc0] sm:$0xf]  ;;  %187 = vmatpush.bf16.msra.mxu0 %v757_v3  ;;  %v825_v12 = vor.u32 %v1000_v9, %v822_v10  ;;  %v967_v13 = vld [vmem:[#allocation5 + $0xcc] sm:$0xf0]  ;;  %v966_v14 = vld [vmem:[#allocation5 + $0xc4] sm:$0xf] }
  0x19   :  { %v750_v15 = vld [vmem:[#allocation5 + $0xd0] sm:$0xf0]  ;;  %201 = vmatpush.bf16.msra.mxu1 %v761_v7  ;;  %v749_v16 = vor.u32 %v967_v13, %v748_v11  ;;  %v812_v18 = vld [vmem:[#allocation5 + $0xc8] sm:$0xf]  ;;  %v999_v19 = vld [vmem:[#allocation5 + $0xd4] sm:$0xf0] }
  0x1a   :  { %355 = vmatpush.bf16.msra.mxu2 %v821_v8  ;;  %v753_v17 = vor.u32 %v966_v14, %v750_v15  ;;  %v998_v20 = vld [vmem:[#allocation5 + $0xcc] sm:$0xf]  ;;  %369 = vmatpush.bf16.msra.mxu3 %v825_v12  ;;  %v813_v21 = vor.u32 %v999_v19, %v812_v18  ;;  %v814_v22 = vld [vmem:[#allocation5 + $0xd8] sm:$0xf0]  ;;  %v740_v23 = vld [vmem:[#allocation5 + $0xa0] sm:$0xf] }
  0x1b   :  { %v965_v24 = vld [vmem:[#allocation5 + $0xac] sm:$0xf0]  ;;  %v817_v25 = vor.u32 %v998_v20, %v814_v22  ;;  %v964_v26 = vld [vmem:[#allocation5 + $0xa4] sm:$0xf]  ;;  %v742_v27 = vld [vmem:[#allocation5 + $0xb0] sm:$0xf0] }
  0x1c   :  { %v804_v28 = vld [vmem:[#allocation5 + $0xa8] sm:$0xf]  ;;  %188 = vmatpush.bf16.msra.mxu0 %v749_v16  ;;  %v741_v29 = vor.u32 %v965_v24, %v740_v23  ;;  %v997_v30 = vld [vmem:[#allocation5 + $0xb4] sm:$0xf0]  ;;  %v996_v31 = vld [vmem:[#allocation5 + $0xac] sm:$0xf]  ;;  %v745_v33 = vor.u32 %v964_v26, %v742_v27 }
  0x1d   :  { %v806_v32 = vld [vmem:[#allocation5 + $0xb8] sm:$0xf0]  ;;  %202 = vmatpush.bf16.msra.mxu1 %v753_v17  ;;  %v805_v34 = vor.u32 %v997_v30, %v804_v28  ;;  %v732_v35 = vld [vmem:[#allocation5 + $0x80] sm:$0xf]  ;;  %v963_v36 = vld [vmem:[#allocation5 + $0x8c] sm:$0xf0] }
  0x1e   :  { %356 = vmatpush.bf16.msra.mxu2 %v813_v21  ;;  %v962_v37 = vld [vmem:[#allocation5 + $0x84] sm:$0xf]  ;;  %370 = vmatpush.bf16.msra.mxu3 %v817_v25  ;;  %v809_v38 = vor.u32 %v996_v31, %v806_v32  ;;  %v734_v39 = vld [vmem:[#allocation5 + $0x90] sm:$0xf0]  ;;  %v796_v40 = vld [vmem:[#allocation5 + $0x88] sm:$0xf]  ;;  %v733_v44 = vor.u32 %v963_v36, %v732_v35 }
  0x1f   :  { %v995_v41 = vld [vmem:[#allocation5 + $0x94] sm:$0xf0]  ;;  %v994_v42 = vld [vmem:[#allocation5 + $0x8c] sm:$0xf]  ;;  %v798_v43 = vld [vmem:[#allocation5 + $0x98] sm:$0xf0]  ;;  %v737_v45 = vor.u32 %v962_v37, %v734_v39 }
  0x20   :  { %189 = vmatpush.bf16.msra.mxu0 %v741_v29  ;;  %v797_v46 = vor.u32 %v995_v41, %v796_v40  ;;  %v724_v47 = vld [vmem:[#allocation5 + $0x60] sm:$0xf]  ;;  %v961_v48 = vld [vmem:[#allocation5 + $0x6c] sm:$0xf0]  ;;  %v960_v49 = vld [vmem:[#allocation5 + $0x64] sm:$0xf]  ;;  %v801_v50 = vor.u32 %v994_v42, %v798_v43 }
  0x21   :  { %203 = vmatpush.bf16.msra.mxu1 %v745_v33  ;;  %v726_v51 = vld [vmem:[#allocation5 + $0x70] sm:$0xf0]  ;;  %v788_v52 = vld [vmem:[#allocation5 + $0x68] sm:$0xf]  ;;  %v993_v53 = vld [vmem:[#allocation5 + $0x74] sm:$0xf0]  ;;  %v725_v56 = vor.u32 %v961_v48, %v724_v47 }
  0x22   :  { %357 = vmatpush.bf16.msra.mxu2 %v805_v34  ;;  %371 = vmatpush.bf16.msra.mxu3 %v809_v38  ;;  %v992_v54 = vld [vmem:[#allocation5 + $0x6c] sm:$0xf]  ;;  %v790_v55 = vld [vmem:[#allocation5 + $0x78] sm:$0xf0]  ;;  %v729_v57 = vor.u32 %v960_v49, %v726_v51  ;;  %v789_v58 = vor.u32 %v993_v53, %v788_v52  ;;  %v716_v59 = vld [vmem:[#allocation5 + $0x40] sm:$0xf] }
  0x23   :  { %v959_v60 = vld [vmem:[#allocation5 + $0x4c] sm:$0xf0]  ;;  %v958_v61 = vld [vmem:[#allocation5 + $0x44] sm:$0xf]  ;;  %v793_v62 = vor.u32 %v992_v54, %v790_v55  ;;  %v718_v63 = vld [vmem:[#allocation5 + $0x50] sm:$0xf0] }
  0x24   :  { %190 = vmatpush.bf16.msra.mxu0 %v733_v44  ;;  %v780_v0 = vld [vmem:[#allocation5 + $0x48] sm:$0xf]  ;;  %v991_v1 = vld [vmem:[#allocation5 + $0x54] sm:$0xf0]  ;;  %v990_v2 = vld [vmem:[#allocation5 + $0x4c] sm:$0xf]  ;;  %v717_v4 = vor.u32 %v959_v60, %v716_v59  ;;  %v721_v5 = vor.u32 %v958_v61, %v718_v63 }
  0x25   :  { %204 = vmatpush.bf16.msra.mxu1 %v737_v45  ;;  %v782_v3 = vld [vmem:[#allocation5 + $0x58] sm:$0xf0]  ;;  %v781_v6 = vor.u32 %v991_v1, %v780_v0  ;;  %v708_v7 = vld [vmem:[#allocation5 + $0x20] sm:$0xf]  ;;  %v957_v8 = vld [vmem:[#allocation5 + $0x2c] sm:$0xf0] }
  0x26   :  { %358 = vmatpush.bf16.msra.mxu2 %v797_v46  ;;  %372 = vmatpush.bf16.msra.mxu3 %v801_v50  ;;  %v956_v9 = vld [vmem:[#allocation5 + $0x24] sm:$0xf]  ;;  %v785_v10 = vor.u32 %v990_v2, %v782_v3  ;;  %v710_v11 = vld [vmem:[#allocation5 + $0x30] sm:$0xf0]  ;;  %v772_v12 = vld [vmem:[#allocation5 + $0x28] sm:$0xf]  ;;  %v709_v16 = vor.u32 %v957_v8, %v708_v7 }
  0x27   :  { %v989_v13 = vld [vmem:[#allocation5 + $0x34] sm:$0xf0]  ;;  %v988_v14 = vld [vmem:[#allocation5 + $0x2c] sm:$0xf]  ;;  %v774_v15 = vld [vmem:[#allocation5 + $0x38] sm:$0xf0]  ;;  %v713_v17 = vor.u32 %v956_v9, %v710_v11 }
  0x28   :  { %191 = vmatpush.bf16.msra.mxu0 %v725_v56  ;;  %v773_v18 = vor.u32 %v989_v13, %v772_v12  ;;  %v700_v19 = vld [vmem:[#allocation5] sm:$0xf]  ;;  %v955_v20 = vld [vmem:[#allocation5 + $0xc] sm:$0xf0]  ;;  %v954_v21 = vld [vmem:[#allocation5 + $0x4] sm:$0xf]  ;;  %v777_v22 = vor.u32 %v988_v14, %v774_v15 }
  0x29   :  { %205 = vmatpush.bf16.msra.mxu1 %v729_v57  ;;  %v702_v23 = vld [vmem:[#allocation5 + $0x10] sm:$0xf0]  ;;  %v764_v24 = vld [vmem:[#allocation5 + $0x8] sm:$0xf]  ;;  %v987_v25 = vld [vmem:[#allocation5 + $0x14] sm:$0xf0]  ;;  %v701_v28 = vor.u32 %v955_v20, %v700_v19 }
  0x2a   :  { %359 = vmatpush.bf16.msra.mxu2 %v789_v58  ;;  %373 = vmatpush.bf16.msra.mxu3 %v793_v62  ;;  %v986_v26 = vld [vmem:[#allocation5 + $0xc] sm:$0xf]  ;;  %v766_v27 = vld [vmem:[#allocation5 + $0x18] sm:$0xf0]  ;;  %v82_v29 = vld [vmem:[#allocation2] sm:$0xff]  ;;  %v705_v31 = vor.u32 %v954_v21, %v702_v23  ;;  %v765_v32 = vor.u32 %v987_v25, %v764_v24  ;;  %s1168_s17 = smov [#allocation10]  }
  0x2b   :  { %v83_v30 = vld [vmem:[#allocation2 + $0x8] sm:$0xff]  ;;  %v769_v33 = vor.u32 %v986_v26, %v766_v27  ;;  %v975_v42 = vld [vmem:[#allocation8 + $0x28] sm:$0xff]  ;;  %v974_v46 = vld [vmem:[#allocation8 + $0x20] sm:$0xff]  ;;  %s681_s18 = sshll.u32 %s1168_s17, 4  ;;  %s683_s21 = sshll.u32 %s1228_s5, 4  ;;  %s682_s18 = int_to_ptr.vmem [resolvable:$true] %s681_s18  ;;  %s684_s21 = int_to_ptr.hbm [resolvable:$true] %s683_s21 }
  0x2c   :  { %192 = vmatpush.bf16.msra.mxu0 %v717_v4  ;;  %v977_v34 = vld [vmem:[#allocation8 + $0x38] sm:$0xff]  ;;  %v84_v35 = vpack.c.bf16 %v83_v30, %v82_v29  ;;  %v976_v38 = vld [vmem:[#allocation8 + $0x30] sm:$0xff]  ;;  %v983_v44 = vld [vmem:[#allocation8 + $0x68] sm:$0xff] }
  0x2d   :  { %206 = vmatpush.bf16.msra.mxu1 %v721_v5  ;;  %v985_v36 = vld [vmem:[#allocation8 + $0x78] sm:$0xff]  ;;  %v984_v40 = vld [vmem:[#allocation8 + $0x70] sm:$0xff]  ;;  %v1007_v45 = vld [vmem:[#allocation8 + $0xa8] sm:$0xff] }
  0x2e   :  { %360 = vmatpush.bf16.msra.mxu2 %v781_v6  ;;  %374 = vmatpush.bf16.msra.mxu3 %v785_v10  ;;  %v1009_v37 = vld [vmem:[#allocation8 + $0xb8] sm:$0xff]  ;;  %v1008_v41 = vld [vmem:[#allocation8 + $0xb0] sm:$0xff]  ;;  %v1015_v47 = vld [vmem:[#allocation8 + $0xe8] sm:$0xff] }
  0x2f   :  { %v1017_v39 = vld [vmem:[#allocation8 + $0xf8] sm:$0xff]  ;;  %v1016_v43 = vld [vmem:[#allocation8 + $0xf0] sm:$0xff]  ;;  %v982_v48 = vld [vmem:[#allocation8 + $0x60] sm:$0xff] }
  0x30   :  { %193 = vmatpush.bf16.msra.mxu0 %v709_v16  ;;  %v973_v49 = vld [vmem:[#allocation8 + $0x18] sm:$0xff]  ;;  %v1006_v51 = vld [vmem:[#allocation8 + $0xa0] sm:$0xff]  ;;  %v972_v53 = vld [vmem:[#allocation8 + $0x10] sm:$0xff] }
  0x31   :  { %207 = vmatpush.bf16.msra.mxu1 %v713_v17  ;;  %v981_v50 = vld [vmem:[#allocation8 + $0x58] sm:$0xff]  ;;  %v1014_v52 = vld [vmem:[#allocation8 + $0xe0] sm:$0xff]  ;;  %v980_v54 = vld [vmem:[#allocation8 + $0x50] sm:$0xff] }
  0x32   :  { %361 = vmatpush.bf16.msra.mxu2 %v773_v18  ;;  %375 = vmatpush.bf16.msra.mxu3 %v777_v22  ;;  %v1005_v55 = vld [vmem:[#allocation8 + $0x98] sm:$0xff]  ;;  %v971_v57 = vld [vmem:[#allocation8 + $0x8] sm:$0xff]  ;;  %v1004_v59 = vld [vmem:[#allocation8 + $0x90] sm:$0xff] }
  0x33   :  { %v1013_v56 = vld [vmem:[#allocation8 + $0xd8] sm:$0xff]  ;;  %v979_v58 = vld [vmem:[#allocation8 + $0x48] sm:$0xff]  ;;  %v1012_v60 = vld [vmem:[#allocation8 + $0xd0] sm:$0xff] }
  0x34   :  { %194 = vmatpush.bf16.msra.mxu0 %v701_v28  ;;  %v970_v61 = vld [vmem:[#allocation8] sm:$0xff]  ;;  %v1003_v63 = vld [vmem:[#allocation8 + $0x88] sm:$0xff]  ;;  %v101_v3 = vld [vmem:[#allocation7] sm:$0x3] }
  0x35   :  { %208 = vmatpush.bf16.msra.mxu1 %v705_v31  ;;  %v978_v62 = vld [vmem:[#allocation8 + $0x40] sm:$0xff]  ;;  %v1011_v0 = vld [vmem:[#allocation8 + $0xc8] sm:$0xff]  ;;  %v103_v6 = vperm.slane %v101_v3, 0  ;;  %v104_v7 = vperm.slane %v101_v3, 1  ;;  %v269_v9 = vld [vmem:[#allocation7 + $0x2] sm:$0x3] }
  0x36   :  { %362 = vmatpush.bf16.msra.mxu2 %v765_v32  ;;  %376 = vmatpush.bf16.msra.mxu3 %v769_v33  ;;  %v1002_v1 = vld [vmem:[#allocation8 + $0x80] sm:$0xff]  ;;  %v271_v16 = vperm.slane %v269_v9, 0  ;;  %v272_v19 = vperm.slane %v269_v9, 1 }
  0x37   :  { %195 = vmatmul.bf16.vlgmr.msra.gmra.mxu0 %v84_v35  ;;  %v1010_v2 = vld [vmem:[#allocation8 + $0xc0] sm:$0xff] }
  0x38   :  { %209 = vmatmul.bf16.vlgmr.msra.gmra.mxu1 %v84_v35  ;;  %517 = vmatpush.bf16.msrb.mxu0 %v1009_v37 }
  0x39   :  { %363 = vmatmul.bf16.vlgmr.msra.gmra.mxu2 %v84_v35  ;;  %377 = vmatmul.bf16.vlgmr.msra.gmra.mxu3 %v84_v35 }
  0x3a   :  { %641 = vmatpush.bf16.msrb.mxu2 %v977_v34  ;;  %655 = vmatpush.bf16.msrb.mxu3 %v985_v36 }
  0x3b   :  { %531 = vmatpush.bf16.msrb.mxu1 %v1017_v39 }
  0x3c   :  { %518 = vmatpush.bf16.msrb.mxu0 %v1008_v41 }
  0x3e   :  { %642 = vmatpush.bf16.msrb.mxu2 %v976_v38  ;;  %656 = vmatpush.bf16.msrb.mxu3 %v984_v40 }
  0x3f   :  { %532 = vmatpush.bf16.msrb.mxu1 %v1016_v43  ;;  %v1029_v43 = vld [vmem:[%s1227_s4] ss:$0 sm:$0xff] }
  0x40   :  { %519 = vmatpush.bf16.msrb.mxu0 %v1007_v45 }
  0x42   :  { %643 = vmatpush.bf16.msrb.mxu2 %v975_v42  ;;  %657 = vmatpush.bf16.msrb.mxu3 %v983_v44 }
  0x43   :  { %533 = vmatpush.bf16.msrb.mxu1 %v1015_v47 }
  0x44   :  { %520 = vmatpush.bf16.msrb.mxu0 %v1006_v51 }
  0x46   :  { %644 = vmatpush.bf16.msrb.mxu2 %v974_v46  ;;  %658 = vmatpush.bf16.msrb.mxu3 %v982_v48 }
  0x47   :  { %534 = vmatpush.bf16.msrb.mxu1 %v1014_v52 }
  0x48   :  { %521 = vmatpush.bf16.msrb.mxu0 %v1005_v55 }
  0x4a   :  { %645 = vmatpush.bf16.msrb.mxu2 %v973_v49  ;;  %659 = vmatpush.bf16.msrb.mxu3 %v981_v50 }
  0x4b   :  { %535 = vmatpush.bf16.msrb.mxu1 %v1013_v56 }
  0x4c   :  { %522 = vmatpush.bf16.msrb.mxu0 %v1004_v59 }
  0x4e   :  { %646 = vmatpush.bf16.msrb.mxu2 %v972_v53  ;;  %660 = vmatpush.bf16.msrb.mxu3 %v980_v54 }
  0x4f   :  { %536 = vmatpush.bf16.msrb.mxu1 %v1012_v60 }
  0x50   :  { %523 = vmatpush.bf16.msrb.mxu0 %v1003_v63 }
  0x52   :  { %647 = vmatpush.bf16.msrb.mxu2 %v971_v57  ;;  %661 = vmatpush.bf16.msrb.mxu3 %v979_v58 }
  0x53   :  { %537 = vmatpush.bf16.msrb.mxu1 %v1011_v0 }
  0x54   :  { %524 = vmatpush.bf16.msrb.mxu0 %v1002_v1 }
  0x56   :  { %648 = vmatpush.bf16.msrb.mxu2 %v970_v61  ;;  %662 = vmatpush.bf16.msrb.mxu3 %v978_v62 }
  0x57   :  { %538 = vmatpush.bf16.msrb.mxu1 %v1010_v2 }
  0xb4   :  { %v196_v4 = vpop.f32.mrf.mxu0 }
  0xb5   :  { %v210_v5 = vpop.f32.mrf.mxu1  ;;  %v197_v8 = vadd.f32 %v196_v4, %v103_v6 }
  0xb6   :  { %v211_v11 = vadd.f32 %v210_v5, %v104_v7 }
  0xb7   :  { %v215_v18 = vmax.f32 %v197_v8, 0.0 }
  0xb8   :  { %v216_v21 = vmax.f32 %v211_v11, 0.0 }
  0xbc   :  { %v364_v10 = vpop.f32.mrf.mxu2  ;;  %v378_v12 = vpop.f32.mrf.mxu3 }
  0xbd   :  { %v198_v13 = vpop.f32.mrf.mxu0  ;;  %v212_v15 = vpop.f32.mrf.mxu1  ;;  %v365_v24 = vadd.f32 %v364_v10, %v271_v16  ;;  %v379_v26 = vadd.f32 %v378_v12, %v272_v19 }
  0xbe   :  { %v199_v14 = vadd.f32 %v198_v13, %v103_v6  ;;  %v213_v17 = vadd.f32 %v212_v15, %v104_v7 }
  0xbf   :  { %v383_v31 = vmax.f32 %v365_v24, 0.0  ;;  %v384_v33 = vmax.f32 %v379_v26, 0.0 }
  0xc0   :  { %v217_v20 = vmax.f32 %v199_v14, 0.0  ;;  %v218_v22 = vmax.f32 %v213_v17, 0.0 }
  0xc2   :  { %v219_v23 = vpack.c.bf16 %v217_v20, %v215_v18  ;;  %v220_v25 = vpack.c.bf16 %v218_v22, %v216_v21 }
  0xc4   :  { %v366_v27 = vpop.f32.mrf.mxu2  ;;  %649 = vmatmul.bf16.vlgmr.msrb.gmra.mxu2 %v219_v23  ;;  %v380_v29 = vpop.f32.mrf.mxu3  ;;  %663 = vmatmul.bf16.vlgmr.msrb.gmra.mxu3 %v220_v25 }
  0xc5   :  { %v367_v28 = vadd.f32 %v366_v27, %v271_v16  ;;  %v381_v30 = vadd.f32 %v380_v29, %v272_v19 }
  0xc7   :  { %v385_v32 = vmax.f32 %v367_v28, 0.0  ;;  %v386_v34 = vmax.f32 %v381_v30, 0.0 }
  0xc9   :  { %v387_v35 = vpack.c.bf16 %v385_v32, %v383_v31  ;;  %v388_v36 = vpack.c.bf16 %v386_v34, %v384_v33 }
  0xcb   :  { %525 = vmatmul.bf16.vlgmr.msrb.gmra.mxu0 %v387_v35  ;;  %539 = vmatmul.bf16.vlgmr.msrb.gmra.mxu1 %v388_v36 }
 0x147   :  { %v650_v39 = vpop.f32.mrf.mxu2  ;;  %v664_v41 = vpop.f32.mrf.mxu3 }
 0x148   :  { %v526_v37 = vpop.f32.mrf.mxu0  ;;  %v540_v38 = vpop.f32.mrf.mxu1 }
 0x149   :  { %v541_v40 = vadd.f32 %v540_v38, %v526_v37 }
 0x14b   :  { %v651_v42 = vadd.f32 %v650_v39, %v541_v40 }
 0x14d   :  { %v665_v44 = vadd.f32 %v664_v41, %v651_v42 }
 0x14f   :  { %v673_v45 = vadd.f32 %v1029_v43, %v665_v44  ;;  %v652_v49 = vpop.f32.mrf.mxu2  ;;  %v666_v51 = vpop.f32.mrf.mxu3 }
 0x150   :  { %v528_v46 = vpop.f32.mrf.mxu0  ;;  %v542_v47 = vpop.f32.mrf.mxu1 }
 0x151   :  { %675 = vst [vmem:[#allocation10] sm:$0xff] %v673_v45  ;;  %v543_v48 = vadd.f32 %v542_v47, %v528_v46 }
 0x153   :  { %v653_v50 = vadd.f32 %v652_v49, %v543_v48 }
 0x155   :  { %v667_v52 = vadd.f32 %v666_v51, %v653_v50 }
 0x157   :  { %v674_v53 = vadd.f32 %v1029_v43, %v667_v52 }
 0x159   :  { %676 = vst [vmem:[#allocation10 + $0x8] sm:$0xff] %v674_v53 }
 0x15a   :  { %689 = dma.vmem_to_hbm [thread:$0]  %s682_s18, 256, %s684_s21, [#allocation4], %s1162_s30, %s1162_s30, %s1163_s6  }
 0x15b   :  { %1156 = dma.done.wait [#allocation4], 256  }
 0x15c   :  { %1157 = vsyncadd [#allocation4], 4294967040 }
 0x15d   :  { %694 = vsyncpa [#allocation3], 1 }
 0x15e   :  { %695 = vsyncpa [#allocation6], 1 }
 0x15f   :  { %696 = vsyncpa [#allocation9], 1 }
 0x160   :  { %697 = vsyncpa [#allocation4], 1 }

</bundles_post_ra>
